<compile_context>
chip_gen: v7x
topology: tpu7x:2x2x1
jax: 0.10.0
libtpu: 0.0.40
codegen_flags: <defaults>
</compile_context>

<pallas_src>
import jax
import jax.numpy as jnp
from jax.experimental import pallas as pl
from jax.experimental.pallas import tpu as pltpu


def _linear_kernel(xT_ref, w_ref, b_ref, o_ref):
    # xT_ref: (in_f, TN) VMEM  — batch lane-dense
    # w_ref : (in_f, 1)  VMEM  — broadcast along lanes
    # b_ref : (1, 1)     SMEM  — scalar bias
    # o_ref : (1, TN)    VMEM  — lane-dense output
    prod = xT_ref[...] * w_ref[...]              # VPU mul, lane broadcast of w
    acc = jnp.sum(prod, axis=0, keepdims=True)   # XLU sublane reduce (9 rows)
    o_ref[...] = (acc + b_ref[0, 0]).astype(o_ref.dtype)


def linear_pallas(x, w, b, *, block_n=512):
    """y = x @ w.T + b   (x: (N, in_f) f32, w: (1, in_f), b: (1,)) -> (N, 1)."""
    N, in_f = x.shape
    out_f = w.shape[0]

    # Lane-dense layout: put the batch axis on the 128-lane dimension.
    xT = jnp.transpose(x)                # (in_f, N)
    w_col = jnp.transpose(w)             # (in_f, 1)
    b2d = jnp.reshape(b, (1, 1))         # scalar, lives in SMEM

    # Tile the batch (lane) axis; small N uses a single full-array block.
    tn = block_n if N >= block_n else N
    n_pad = (-N) % tn
    if n_pad:
        xT = jnp.pad(xT, ((0, 0), (0, n_pad)))
    n_padded = N + n_pad
    grid = (n_padded // tn,)

    yT = pl.pallas_call(
        _linear_kernel,
        out_shape=jax.ShapeDtypeStruct((out_f, n_padded), x.dtype),
        grid=grid,
        in_specs=[
            pl.BlockSpec((in_f, tn), lambda i: (0, i)),        # xT tile
            pl.BlockSpec((in_f, out_f), lambda i: (0, 0)),     # weight, resident
            pl.BlockSpec(memory_space=pltpu.MemorySpace.SMEM), # scalar bias
        ],
        out_specs=pl.BlockSpec((out_f, tn), lambda i: (0, i)),
        compiler_params=pltpu.CompilerParams(
            dimension_semantics=("parallel",)                  # both TCs on v7x
        ),
    )(xT, w_col, b2d)

    return jnp.transpose(yT[:, :N])      # back to (N, out_f)


if __name__ == "__main__":
    key = jax.random.PRNGKey(0)
    k_x, k_w, k_b, k_x2 = jax.random.split(key, 4)

    IN_F, OUT_F = 9, 1  # nn.Linear(9, 1)
    bound = 1.0 / jnp.sqrt(jnp.float32(IN_F))
    w = jax.random.uniform(k_w, (OUT_F, IN_F), minval=-bound, maxval=bound,
                           dtype=jnp.float32)   # PyTorch weight layout (out, in)
    b = jax.random.uniform(k_b, (OUT_F,), minval=-bound, maxval=bound,
                           dtype=jnp.float32)

    # Small batch (matches the module's intended usage).
    N = 8
    x = jax.random.normal(k_x, (N, IN_F), dtype=jnp.float32)
    y = linear_pallas(x, w, b)
    jax.block_until_ready(y)
    y_ref = x @ w.T + b
    assert y.shape == (N, OUT_F)
    assert jnp.allclose(y, y_ref, atol=1e-5, rtol=1e-5)

    # Larger, non-tile-multiple batch to exercise the tiled + padded path.
    N2 = 600
    x2 = jax.random.normal(k_x2, (N2, IN_F), dtype=jnp.float32)
    y2 = linear_pallas(x2, w, b, block_n=512)
    jax.block_until_ready(y2)
    y2_ref = x2 @ w.T + b
    assert y2.shape == (N2, OUT_F)
    assert jnp.allclose(y2, y2_ref, atol=1e-5, rtol=1e-5)

    print("KERNEL_OK")
</pallas_src>

<mosaic_0001>
module attributes {stable_mosaic.version = 11 : i64} {
  func.func @_linear_kernel(%arg0: i32, %arg1: memref<9x8xf32, #tpu.memory_space<vmem>>, %arg2: memref<9x1xf32, #tpu.memory_space<vmem>>, %arg3: memref<1x1xf32, #tpu.memory_space<smem>>, %arg4: memref<1x8xf32, #tpu.memory_space<vmem>>) attributes {dimension_semantics = [#tpu.dimension_semantics<parallel>], iteration_bounds = array<i64: 1>, scalar_prefetch = 0 : i64, scratch_operands = 0 : i64, tpu.core_type = #tpu.core_type<tc>, window_params = [{transform_indices = @transform_0, window_bounds = array<i64: 9, 8>}, {pipeline_mode = #tpu.pipeline_mode<synchronous>, transform_indices = @transform_1, window_bounds = array<i64: 9, 1>}, {transform_indices = @transform_2, window_bounds = array<i64: 1, 1>}, {transform_indices = @transform_3, window_bounds = array<i64: 1, 8>}]} {
    %c0 = arith.constant 0 : index
    %c0_0 = arith.constant 0 : index
    %0 = vector.load %arg1[%c0, %c0_0] : memref<9x8xf32, #tpu.memory_space<vmem>>, vector<9x8xf32>
    %c0_1 = arith.constant 0 : index
    %c0_2 = arith.constant 0 : index
    %1 = vector.load %arg2[%c0_1, %c0_2] : memref<9x1xf32, #tpu.memory_space<vmem>>, vector<9x1xf32>
    %2 = vector.broadcast %1 : vector<9x1xf32> to vector<9x8xf32>
    %3 = arith.mulf %0, %2 : vector<9x8xf32>
    %cst = arith.constant dense<0.000000e+00> : vector<8xf32>
    %4 = vector.multi_reduction <add>, %3, %cst [0] : vector<9x8xf32> to vector<8xf32>
    %5 = vector.shape_cast %4 : vector<8xf32> to vector<1x8xf32>
    %c0_3 = arith.constant 0 : index
    %c0_4 = arith.constant 0 : index
    %6 = memref.load %arg3[%c0_3, %c0_4] : memref<1x1xf32, #tpu.memory_space<smem>>
    %7 = vector.broadcast %6 : f32 to vector<1x8xf32>
    %8 = arith.addf %5, %7 : vector<1x8xf32>
    %c0_5 = arith.constant 0 : index
    %c0_6 = arith.constant 0 : index
    %9 = vector.load %arg4[%c0_5, %c0_6] : memref<1x8xf32, #tpu.memory_space<vmem>>, vector<1x8xf32>
    tpu.vector_store %arg4[%c0_5, %c0_6], %8 {strides = array<i32>} : memref<1x8xf32, #tpu.memory_space<vmem>>, vector<1x8xf32>,
    return
  }
  func.func @transform_0(%arg0: i32) -> (i32, i32) {
    %c0_i32 = arith.constant 0 : i32
    %c0_i32_0 = arith.constant 0 : i32
    return %c0_i32, %arg0 : i32, i32
  }
  func.func @transform_1(%arg0: i32) -> (i32, i32) {
    %c0_i32 = arith.constant 0 : i32
    %c0_i32_0 = arith.constant 0 : i32
    %c0_i32_1 = arith.constant 0 : i32
    return %c0_i32, %c0_i32_0 : i32, i32
  }
  func.func @transform_2(%arg0: i32) -> (i32, i32) {
    %c0_i32 = arith.constant 0 : i32
    %c0_i32_0 = arith.constant 0 : i32
    %c0_i32_1 = arith.constant 0 : i32
    return %c0_i32, %c0_i32_0 : i32, i32
  }
  func.func @transform_3(%arg0: i32) -> (i32, i32) {
    %c0_i32 = arith.constant 0 : i32
    %c0_i32_0 = arith.constant 0 : i32
    return %c0_i32, %arg0 : i32, i32
  }
}

</mosaic_0001>

<bundles_post_ra>
// kernel: tpu_custom_call.1
= control target key start
LH: loop header
LB: loop body
LE: loop exit
PB: predicated region body
PF: predicated region fallthrough
CT: control target
= control target key end

     0   :  { %v88_v1 = vmov 0   ;;  %s139_s0 = inlined_call_operand.vmem [shape: f32[9,8], index: 0, kind: input, shape index: {}]   ;;  %s140_s1 = inlined_call_operand.vmem [shape: f32[9,1], index: 1, kind: input, shape index: {}]   ;;  %s141_s2 = inlined_call_operand.<no memory space> [shape: f32[1,1], index: 2, kind: input, shape index: {}]   ;;  %s142_s3 = inlined_call_operand.hbm [shape: f32[1,8], index: 3, kind: output, shape index: {}]  }
   0x1   :  { %v18_v0 = vld [vmem:[%s140_s1] sm:$0xff]  ;;  %63 = vset.pattern.permute.xlu0 %v88_v1 }
   0x2   :  { %9 = vsyncpa [#allocation4], 0  ;;  %22 = vperm.xlu0 %63, %v18_v0   ;;  %v19_v2 = vld [vmem:[%s140_s1 + $0x8] sm:$0x1]  ;;  %v16_v4 = vld [vmem:[%s139_s0] sm:$0xff]  ;;  %vm32_vm0 = vcmask 64512   ;;  %v44_v17 = vstv %s141_s2 }
   0x3   :  { %v17_v5 = vld [vmem:[%s139_s0 + $0x8] sm:$0x1]  ;;  %vm34_vm1 = vcmask 57344   ;;  %s89_s21 = smov [#allocation3]  }
   0x4   :  { %s53_s0 = sshll.u32 %s89_s21, 4  ;;  %s54_s0 = int_to_ptr.vmem [resolvable:$true] %s53_s0 }
   0x5   :  { %s64_s22 = scalar_lea.vmem %s54_s0, 16  ;;  %s68_s23 = scalar_lea.vmem %s54_s0, 32 }
   0x6   :  { %27 = vperm.xlu0 %63, %v19_v2   ;;  %p65_p0 = scmp.ne.s32.totalorder %s54_s0, %s64_s22  ;;  %p69_p1 = scmp.lt.s32.totalorder %s54_s0, %s54_s0 }
   0x7   :  { %p70_p2 = scmp.lt.s32.totalorder %s68_s23, %s64_s22 }
   0x9   :  { %p71_p3 = por %p70_p2, %p69_p1 }
   0xb   :  { %p72_p4 = pnand %p71_p3, %p65_p0 }
  0x81   :  { %v23_v3 = vpop.permute.xlu0 %22 }
  0x82   :  { %v30_v6 = vmul.f32 %v23_v3, %v16_v4 }
  0x84   :  { %v33_v9 = vsel %vm32_vm0, %v30_v6, 0.0 }
  0x85   :  { %v28_v7 = vpop.permute.xlu0 %27 }
  0x86   :  { %v31_v8 = vmul.f32 %v28_v7, %v17_v5 }
  0x88   :  { %v35_v10 = vsel %vm34_vm1, %v31_v8, 0.0 }
  0x89   :  { %v36_v11 = vadd.f32 %v35_v10, %v33_v9 }
  0x8b   :  { %v37_v12 = vrot.slane %v36_v11, 4 }
  0x8d   :  { %v38_v13 = vadd.f32 %v37_v12, %v36_v11 }
  0x8f   :  { %v39_v14 = vrot.slane %v38_v13, 2 }
  0x91   :  { %v40_v15 = vadd.f32 %v39_v14, %v38_v13 }
  0x93   :  { %v41_v16 = vrot.slane %v40_v15, 1 }
  0x95   :  { %v42_v18 = vadd.f32 %v41_v16, %v40_v15 }
  0x97   :  { %v45_v19 = vadd.f32 %v44_v17, %v42_v18 }
  0x99   :  { %46 = vst.msk [vmem:[#allocation3] sm:$0x1] %vm34_vm1, %v45_v19 }
  0x9a   :  { %75 = shalt.err (!%p72_p4)
}
  0x9b   :  { %s76_s26 = scalar_lea.hbm %s142_s3, 16 }
  0x9c   :  { %p77_p5 = scmp.ne.s32.totalorder %s142_s3, %s76_s26  ;;  %p80_p6 = scmp.lt.u32.totalorder %s76_s26, %s142_s3 }
  0x9e   :  { %p82_p7 = pnand %p80_p6, %p77_p5 }
  0xa0   :  { %85 = shalt.err (!%p82_p7)
}
  0xa1   :  { %56 = dma.vmem_to_hbm [thread:$0]  %s54_s0, 16, %s142_s3, [#allocation4]  }
  0xa2   :  { %86 = dma.done.wait [#allocation4], 16  }
  0xa3   :  { %87 = vsyncadd [#allocation4], 4294967280 }
  0xa4   :  { %60 = vsyncpa [#allocation4], 1 }

</bundles_post_ra>
